<compile_context>
chip_gen: v6e
topology: v6e:2x2x1
jax: 0.10.0
libtpu: 0.0.40
codegen_flags: <defaults>
</compile_context>

<pallas_src>
import jax
import jax.numpy as jnp
from jax.experimental import pallas as pl
from jax.experimental.pallas import tpu as pltpu


def _round_up(a, b):
    return (a + b - 1) // b * b


def ensemble_kernel(x_ref, w_ref, b_ref, o_ref, acc_ref):
    """Grid = (batch tiles ["parallel"], HW tiles ["arbitrary"]).

    x_ref   : VMEM [tb, C, thw]   input tile (bf16 or f32), spatial axis on lanes
    w_ref   : VMEM [C, S_pad]     effective head weight, f32 (ensemble + 1/HW folded)
    b_ref   : VMEM [1, S_pad]     effective head bias, f32
    o_ref   : VMEM [tb, S_pad]    output tile (resident across the HW axis)
    acc_ref : VMEM [tb, C] f32    GAP-sum accumulator (scratch)
    """
    hw = pl.program_id(1)

    @pl.when(hw == 0)
    def _init():
        acc_ref[...] = jnp.zeros_like(acc_ref)

    # Partial GAP sum over this spatial tile: cast to f32, lane-reduce (XLU).
    acc_ref[...] += jnp.sum(x_ref[...].astype(jnp.float32), axis=-1)

    @pl.when(hw == pl.num_programs(1) - 1)
    def _finalize():
        xsum = acc_ref[...]                       # [tb, C] f32
        n_chan = xsum.shape[1]                    # static at trace time
        if n_chan >= 128:
            # Real-sized channel dim: one MXU pass, bf16 operands, f32 accumulate.
            logits = jnp.dot(
                xsum.astype(jnp.bfloat16),
                w_ref[...].astype(jnp.bfloat16),
                preferred_element_type=jnp.float32,
            )
        else:
            # Degenerate contraction (K < 128): do it on the VPU, unrolled over C,
            # instead of paying MXU push / result-FIFO pop latency.
            w = w_ref[...]                        # [C, S_pad] f32
            logits = xsum[:, 0:1] * w[0:1, :]
            for c in range(1, n_chan):
                logits = logits + xsum[:, c:c + 1] * w[c:c + 1, :]
        # Bias add stays f32 on the VPU (v5e-safe); lane-dense store.
        o_ref[...] = (logits + b_ref[...]).astype(o_ref.dtype)


def ensemble_forward(x_nchw, ens_weights, model_weights, model_biases,
                     *, x_dtype=jnp.bfloat16, tb=8, thw=None):
    """x_nchw: [B, C, H, W] f32; ens_weights: [M] f32 (already normalized);
    model_weights: [M, C, S] f32; model_biases: [M, S] f32.  Returns [B, S] f32."""
    B, C, H, W = x_nchw.shape
    M, _, S = model_weights.shape
    HW = H * W
    S_pad = _round_up(S, 128)

    # Algebraic fold (exact up to fp reassociation): ensemble weights and the
    # GAP mean scale become a single effective linear head.
    w_eff = jnp.einsum("m,mcs->cs", ens_weights, model_weights) / HW      # [C, S]
    b_eff = jnp.einsum("m,ms->s", ens_weights, model_biases)              # [S]
    w_eff = jnp.pad(w_eff, ((0, 0), (0, S_pad - S)))                      # [C, S_pad]
    b_eff = jnp.pad(b_eff, (0, S_pad - S)).reshape(1, S_pad)              # [1, S_pad]

    # Tile sizes: thw multiple of 128 lanes (>=512 when HW allows), tb multiple
    # of 8 sublanes.  B/HW are zero-padded to the tile grid (exact; see header).
    if thw is None:
        thw = 512 if HW >= 1024 else 128
    thw = _round_up(thw, 128)
    tb = _round_up(tb, 8)
    HW_pad = _round_up(HW, thw)
    B_pad = _round_up(B, tb)

    x3 = x_nchw.reshape(B, C, HW)
    x3 = jnp.pad(x3, ((0, B_pad - B), (0, 0), (0, HW_pad - HW))).astype(x_dtype)

    grid = (B_pad // tb, HW_pad // thw)

    # Explicit scoped-VMEM budget (double-buffered tiles), clamped under v7x's
    # 64 MiB physical VMEM.
    x_itemsize = jnp.dtype(x_dtype).itemsize
    vmem_est = (2 * tb * C * thw * x_itemsize      # double-buffered x tiles
                + 2 * C * S_pad * 4                # W_eff
                + 2 * S_pad * 4                    # b_eff
                + 2 * tb * S_pad * 4               # output tile
                + tb * C * 4)                      # GAP accumulator scratch
    vmem_limit = int(min(max(16 << 20, 2 * vmem_est), 48 << 20))

    cost = pl.CostEstimate(
        flops=B_pad * C * HW_pad + 2 * B_pad * C * S_pad + B_pad * S_pad,
        transcendentals=0,
        bytes_accessed=(B_pad * C * HW_pad * x_itemsize
                        + C * S_pad * 4 + S_pad * 4 + B_pad * S_pad * 4),
    )

    out = pl.pallas_call(
        ensemble_kernel,
        out_shape=jax.ShapeDtypeStruct((B_pad, S_pad), jnp.float32),
        grid_spec=pltpu.PrefetchScalarGridSpec(
            num_scalar_prefetch=0,
            grid=grid,
            in_specs=[
                pl.BlockSpec((tb, C, thw), lambda b, h: (b, 0, h)),    # x tile
                pl.BlockSpec((C, S_pad), lambda b, h: (0, 0)),         # W_eff (resident)
                pl.BlockSpec((1, S_pad), lambda b, h: (0, 0)),         # b_eff (resident)
            ],
            out_specs=pl.BlockSpec((tb, S_pad), lambda b, h: (b, 0)),  # resident over h
            scratch_shapes=[pltpu.VMEM((tb, C), jnp.float32)],         # GAP accumulator
        ),
        compiler_params=pltpu.CompilerParams(
            dimension_semantics=("parallel", "arbitrary"),
            vmem_limit_bytes=vmem_limit,
        ),
        cost_estimate=cost,
    )(x3, w_eff, b_eff)

    return out[:B, :S]


def ensemble_reference(x_nchw, ens_weights, model_weights, model_biases):
    """Pure-JAX reference reproducing the PyTorch forward semantics
    (per-model GAP+linear logits, stack, weighted einsum)."""
    B, C, H, W = x_nchw.shape
    xbar = jnp.mean(x_nchw.reshape(B, C, H * W), axis=-1)                       # [B, C]
    logits = jnp.einsum("bc,mcs->mbs", xbar, model_weights) + model_biases[:, None, :]
    return jnp.einsum("m,mbs->bs", ens_weights, logits)                         # [B, S]


if __name__ == "__main__":
    key = jax.random.PRNGKey(0)
    k_x, k_w, k_b, k_e = jax.random.split(key, 4)

    # Small shapes consistent with the module's forward.
    B, C, H, W = 2, 4, 16, 16       # input batch, channels, spatial
    M = 3                           # number of ensemble members (model_configs)
    S = 16                          # num_classes

    x = jax.random.normal(k_x, (B, C, H, W), dtype=jnp.float32)

    # Deterministic synthetic per-model classifier parameters.
    model_W = jax.random.normal(k_w, (M, C, S), dtype=jnp.float32) * 0.1
    model_b = jax.random.normal(k_b, (M, S), dtype=jnp.float32) * 0.01

    # Ensemble weights: provided unnormalized, normalized as in __init__.
    raw_w = jax.random.uniform(k_e, (M,), dtype=jnp.float32) + 0.5
    ens_w = raw_w / jnp.sum(raw_w)

    out = ensemble_forward(x, ens_w, model_W, model_b)   # bf16 x, f32 accumulation
    out = jax.block_until_ready(out)
    assert out.shape == (B, S)

    # Reference on the identically bf16-quantized input isolates kernel numerics
    # (the kernel accumulates in f32, so only fp reassociation differs).
    x_q = x.astype(jnp.bfloat16).astype(jnp.float32)
    ref_q = ensemble_reference(x_q, ens_w, model_W, model_b)
    assert jnp.allclose(out, ref_q, atol=2e-3, rtol=2e-3), (out, ref_q)

    # Coarse check against the full-f32 module semantics (bf16 input rounding only).
    ref = ensemble_reference(x, ens_w, model_W, model_b)
    assert jnp.allclose(out, ref, atol=5e-2, rtol=5e-2), (out, ref)

    print("KERNEL_OK")
</pallas_src>

<mosaic_0001>
module attributes {stable_mosaic.version = 11 : i64} {
  func.func @ensemble_kernel(%arg0: i32, %arg1: i32, %arg2: memref<8x4x128xbf16, #tpu.memory_space<vmem>>, %arg3: memref<4x128xf32, #tpu.memory_space<vmem>>, %arg4: memref<1x128xf32, #tpu.memory_space<vmem>>, %arg5: memref<8x128xf32, #tpu.memory_space<vmem>>, %arg6: memref<8x4xf32, #tpu.memory_space<vmem>>) attributes {dimension_semantics = [#tpu.dimension_semantics<parallel>, #tpu.dimension_semantics<arbitrary>], iteration_bounds = array<i64: 1, 2>, scalar_prefetch = 0 : i64, scratch_operands = 1 : i64, tpu.core_type = #tpu.core_type<tc>, window_params = [{transform_indices = @transform_0, window_bounds = array<i64: 8, 4, 128>}, {pipeline_mode = #tpu.pipeline_mode<synchronous>, transform_indices = @transform_1, window_bounds = array<i64: 4, 128>}, {pipeline_mode = #tpu.pipeline_mode<synchronous>, transform_indices = @transform_2, window_bounds = array<i64: 1, 128>}, {transform_indices = @transform_3, window_bounds = array<i64: 8, 128>}]} {
    %c0_i32 = arith.constant 0 : i32
    %0 = arith.cmpi eq, %arg1, %c0_i32 : i32
    %1 = arith.extui %0 : i1 to i32
    %c0_i32_0 = arith.constant 0 : i32
    %2 = arith.cmpi ne, %1, %c0_i32_0 : i32
    scf.if %2 {
      %cst_8 = arith.constant 0.000000e+00 : f32
      %12 = vector.broadcast %cst_8 : f32 to vector<8x4xf32>
      %c0_9 = arith.constant 0 : index
      %c0_10 = arith.constant 0 : index
      %13 = vector.load %arg6[%c0_9, %c0_10] : memref<8x4xf32, #tpu.memory_space<vmem>>, vector<8x4xf32>
      tpu.vector_store %arg6[%c0_9, %c0_10], %12 {strides = array<i32>} : memref<8x4xf32, #tpu.memory_space<vmem>>, vector<8x4xf32>,
    } else {
    }
    %c0 = arith.constant 0 : index
    %c0_1 = arith.constant 0 : index
    %3 = vector.load %arg6[%c0, %c0_1] : memref<8x4xf32, #tpu.memory_space<vmem>>, vector<8x4xf32>
    %c0_2 = arith.constant 0 : index
    %c0_3 = arith.constant 0 : index
    %c0_4 = arith.constant 0 : index
    %4 = vector.load %arg2[%c0_2, %c0_3, %c0_4] : memref<8x4x128xbf16, #tpu.memory_space<vmem>>, vector<8x4x128xbf16>
    %5 = arith.extf %4 : vector<8x4x128xbf16> to vector<8x4x128xf32>
    %cst = arith.constant dense<0.000000e+00> : vector<8x4xf32>
    %6 = vector.multi_reduction <add>, %5, %cst [2] : vector<8x4x128xf32> to vector<8x4xf32>
    %7 = arith.addf %3, %6 : vector<8x4xf32>
    %c0_5 = arith.constant 0 : index
    %c0_6 = arith.constant 0 : index
    %8 = vector.load %arg6[%c0_5, %c0_6] : memref<8x4xf32, #tpu.memory_space<vmem>>, vector<8x4xf32>
    tpu.vector_store %arg6[%c0_5, %c0_6], %7 {strides = array<i32>} : memref<8x4xf32, #tpu.memory_space<vmem>>, vector<8x4xf32>,
    %c1_i32 = arith.constant 1 : i32
    %9 = arith.cmpi eq, %arg1, %c1_i32 : i32
    %10 = arith.extui %9 : i1 to i32
    %c0_i32_7 = arith.constant 0 : i32
    %11 = arith.cmpi ne, %10, %c0_i32_7 : i32
    scf.if %11 {
      %c0_8 = arith.constant 0 : index
      %c0_9 = arith.constant 0 : index
      %12 = vector.load %arg6[%c0_8, %c0_9] : memref<8x4xf32, #tpu.memory_space<vmem>>, vector<8x4xf32>
      %c0_10 = arith.constant 0 : index
      %c0_11 = arith.constant 0 : index
      %13 = vector.load %arg3[%c0_10, %c0_11] : memref<4x128xf32, #tpu.memory_space<vmem>>, vector<4x128xf32>
      %14 = vector.extract_strided_slice %12 {offsets = [0, 0], sizes = [8, 1], strides = [1, 1]} : vector<8x4xf32> to vector<8x1xf32>
      %15 = vector.extract_strided_slice %13 {offsets = [0, 0], sizes = [1, 128], strides = [1, 1]} : vector<4x128xf32> to vector<1x128xf32>
      %16 = vector.broadcast %14 : vector<8x1xf32> to vector<8x128xf32>
      %17 = vector.broadcast %15 : vector<1x128xf32> to vector<8x128xf32>
      %18 = arith.mulf %16, %17 : vector<8x128xf32>
      %19 = vector.extract_strided_slice %12 {offsets = [0, 1], sizes = [8, 1], strides = [1, 1]} : vector<8x4xf32> to vector<8x1xf32>
      %20 = vector.extract_strided_slice %13 {offsets = [1, 0], sizes = [1, 128], strides = [1, 1]} : vector<4x128xf32> to vector<1x128xf32>
      %21 = vector.broadcast %19 : vector<8x1xf32> to vector<8x128xf32>
      %22 = vector.broadcast %20 : vector<1x128xf32> to vector<8x128xf32>
      %23 = arith.mulf %21, %22 : vector<8x128xf32>
      %24 = arith.addf %18, %23 : vector<8x128xf32>
      %25 = vector.extract_strided_slice %12 {offsets = [0, 2], sizes = [8, 1], strides = [1, 1]} : vector<8x4xf32> to vector<8x1xf32>
      %26 = vector.extract_strided_slice %13 {offsets = [2, 0], sizes = [1, 128], strides = [1, 1]} : vector<4x128xf32> to vector<1x128xf32>
      %27 = vector.broadcast %25 : vector<8x1xf32> to vector<8x128xf32>
      %28 = vector.broadcast %26 : vector<1x128xf32> to vector<8x128xf32>
      %29 = arith.mulf %27, %28 : vector<8x128xf32>
      %30 = arith.addf %24, %29 : vector<8x128xf32>
      %31 = vector.extract_strided_slice %12 {offsets = [0, 3], sizes = [8, 1], strides = [1, 1]} : vector<8x4xf32> to vector<8x1xf32>
      %32 = vector.extract_strided_slice %13 {offsets = [3, 0], sizes = [1, 128], strides = [1, 1]} : vector<4x128xf32> to vector<1x128xf32>
      %33 = vector.broadcast %31 : vector<8x1xf32> to vector<8x128xf32>
      %34 = vector.broadcast %32 : vector<1x128xf32> to vector<8x128xf32>
      %35 = arith.mulf %33, %34 : vector<8x128xf32>
      %36 = arith.addf %30, %35 : vector<8x128xf32>
      %c0_12 = arith.constant 0 : index
      %c0_13 = arith.constant 0 : index
      %37 = vector.load %arg4[%c0_12, %c0_13] : memref<1x128xf32, #tpu.memory_space<vmem>>, vector<1x128xf32>
      %38 = vector.broadcast %37 : vector<1x128xf32> to vector<8x128xf32>
      %39 = arith.addf %36, %38 : vector<8x128xf32>
      %c0_14 = arith.constant 0 : index
      %c0_15 = arith.constant 0 : index
      %40 = vector.load %arg5[%c0_14, %c0_15] : memref<8x128xf32, #tpu.memory_space<vmem>>, vector<8x128xf32>
      tpu.vector_store %arg5[%c0_14, %c0_15], %39 {strides = array<i32>} : memref<8x128xf32, #tpu.memory_space<vmem>>, vector<8x128xf32>,
    } else {
    }
    return
  }
  func.func @transform_0(%arg0: i32, %arg1: i32) -> (i32, i32, i32) {
    %c0_i32 = arith.constant 0 : i32
    %c0_i32_0 = arith.constant 0 : i32
    return %arg0, %c0_i32, %arg1 : i32, i32, i32
  }
  func.func @transform_1(%arg0: i32, %arg1: i32) -> (i32, i32) {
    %c0_i32 = arith.constant 0 : i32
    %c0_i32_0 = arith.constant 0 : i32
    %c0_i32_1 = arith.constant 0 : i32
    return %c0_i32, %c0_i32_0 : i32, i32
  }
  func.func @transform_2(%arg0: i32, %arg1: i32) -> (i32, i32) {
    %c0_i32 = arith.constant 0 : i32
    %c0_i32_0 = arith.constant 0 : i32
    %c0_i32_1 = arith.constant 0 : i32
    return %c0_i32, %c0_i32_0 : i32, i32
  }
  func.func @transform_3(%arg0: i32, %arg1: i32) -> (i32, i32) {
    %c0_i32 = arith.constant 0 : i32
    %c0_i32_0 = arith.constant 0 : i32
    return %arg0, %c0_i32 : i32, i32
  }
}

</mosaic_0001>

<bundles_post_ra>
// kernel: tpu_custom_call.1
= control target key start
LH: loop header
LB: loop body
LE: loop exit
PB: predicated region body
PF: predicated region fallthrough
CT: control target
= control target key end

     0   :  { %8 = vsyncpa [#allocation4], 0  ;;  %s887_s0 = inlined_call_operand.hbm [shape: bf16[8,4,256], index: 0, kind: input, shape index: {}]   ;;  %s888_s1 = inlined_call_operand.hbm [shape: f32[4,128], index: 1, kind: input, shape index: {}]   ;;  %s889_s2 = inlined_call_operand.vmem [shape: f32[1,128], index: 2, kind: input, shape index: {}]   ;;  %s890_s3 = inlined_call_operand.hbm [shape: f32[8,128], index: 3, kind: output, shape index: {}]  }
   0x1   :  { %10 = vsyncpa [#allocation4 + $0x1], 0 }
   0x2   :  { %11 = vsyncpa [#allocation7], 0 }
   0x3   :  { %12 = vsyncpa [#allocation5], 0  ;;  %s728_s12 = smov 0   ;;  %s730_s13 = smov 0  }
   0x4   :  { %s732_s14 = smov 0   ;;  %s734_s15 = smov 0  }
   0x5   :  { %s736_s16 = smov 0   ;;  %s738_s17 = smov 0  }
   0x6 LB: > { %s457_s18 = sadd.s32 4294967295, %s695_s17   ;;  %s39_s19 = sadd.s32 1, %s683_s14  ;;  %s695_s17 = sphi %s738_s17, %s18_s17   ;;  %s691_s16 = sphi %s736_s16, %s905_s16   ;;  %s687_s15 = sphi %s734_s15, %s904_s15   ;;  %s683_s14 = sphi %s732_s14, %s903_s14   ;;  %s679_s13 = sphi %s730_s13, %s902_s13   ;;  %s675_s12 = sphi %s728_s12, %s901_s12  }
   0x7   : > { %p46_p0 = scmp.ne.s32.totalorder %s683_s14, %s679_s13  ;;  %p47_p1 = scmp.eq.s32.totalorder %s695_s17, 0 }
   0x8   : > { %p52_p2 = scmp.ne.s32.totalorder %s679_s13, %s675_s12  ;;  %p764_p3 = scmp.eq.s32.totalorder %s457_s18, 0 }
   0x9   : > { %p48_p4 = por %p47_p1, %p46_p0  ;;  %p458_p5 = scmp.ge.s32.totalorder %s695_s17, 1 }
   0xa   : > { %p771_p6 = por %p764_p3, %p52_p2  ;;  %p131_p7 = scmp.lt.s32.totalorder %s695_s17, 3 }
   0xb   : > { %s697_s23 = smov [#allocation6]   ;;  %p492_p10 = scmp.lt.s32.totalorder %s695_s17, 2 }
   0xc   : > { %s894_s21 = scalar_select %p771_p6, 1, 0 }
   0xd   : > { %p776_p8 = pnand %p458_p5, %p131_p7  ;;  %s144_s24 = sshll.u32 %s697_s23, 4  ;;  %s145_s24 = int_to_ptr.vmem [resolvable:$true] %s144_s24 }
   0xe   : > { %s158_s25 = sand.u32 1, %s683_s14   ;;  %p786_p12 = pnand %p492_p10, %p48_p4 }
   0xf   : > { %s895_s22 = scalar_select %p776_p8, 1, 0 }
  0x10   : > { %p483_p9 = pneg %p776_p8  ;;  %s570_s27 = scalar_lea.vmem %s145_s24, 64 }
  0x11   : > { %p571_p0 = scmp.ne.s32.totalorder %s145_s24, %s570_s27  ;;  %p578_p5 = scmp.lt.s32.totalorder %s145_s24, %s145_s24 }
  0x12   : > { %p484_p11 = pnand %p483_p9, %p764_p3  ;;  %p579_p7 = scmp.lt.s32.totalorder %s570_s27, %s570_s27 }
  0x14   : > { %p561_p13 = pneg %p484_p11  ;;  %p580_p6 = por %p579_p7, %p578_p5 }
  0x16   : > { %p573_p1 = pnand %p571_p0, %p561_p13 }
  0x18   : > { %p574_p2 = pneg %p573_p1 }
  0x1a   : > { %p581_p8 = pnand %p580_p6, %p574_p2 }
  0x1c   : > { %584 = shalt.err (!%p581_p8)
}
  0x1d   : > { %486 = dma.hbm_to_vmem [thread:$0]  (!%p484_p11), %s888_s1, 64, %s145_s24, [#allocation7]  }
  0x1e   : > { %s27_s30 = sadd.s32 1, %s691_s16  ;;  %s461_s4 = sshll.u32 %s158_s25, 4 }
  0x1f   : > { %p28_p4 = scmp.ge.s32.totalorder %s27_s30, 2  ;;  %s462_s5 = sshll.u32 %s691_s16, 5 }
  0x20   : > { %s162_s6 = scalar_lea.vmem [#allocation3], %s461_s4  ;;  %s170_s10 = scalar_lea.hbm %s887_s0, %s462_s5 }
  0x21   : > { %s171_s7 = sshll.u32 %s162_s6, 4  ;;  %s907_s30 = smov (%p28_p4, %s27_s30), 0  ;;  %s172_s7 = int_to_ptr.vmem [resolvable:$true] %s171_s7 }
  0x22   : > { %s35_s11 = ssub.s32 %s691_s16, %s907_s30  ;;  %s159_s23 = scalar_lea.sflag [#allocation4], %s158_s25 }
  0x23   : > { %p37_p6 = scmp.eq.s32.totalorder %s35_s11, 0  ;;  %p587_p8 = pneg %p786_p12 }
  0x24   : > { %s598_s24 = scalar_lea.vmem %s172_s7, 256  ;;  %s698_s27 = smov [#allocation3]  }
  0x25   : > { %s805_s12 = scalar_select %p37_p6, %s683_s14, %s39_s19  }
  0x26   : > { %p599_p9 = scmp.ne.s32.totalorder %s172_s7, %s598_s24  ;;  %s603_s28 = sshll.u32 %s698_s27, 4  ;;  %s604_s28 = int_to_ptr.vmem [resolvable:$false] %s603_s28 }
  0x27   : > { %s605_s29 = scalar_lea.vmem %s604_s28, 512  ;;  %p606_p13 = scmp.lt.s32.totalorder %s172_s7, %s604_s28 }
  0x28   : > { %p601_p10 = pnand %p599_p9, %p587_p8  ;;  %p607_p0 = scmp.lt.s32.totalorder %s605_s29, %s598_s24 }
  0x2a   : > { %p602_p11 = pneg %p601_p10  ;;  %p608_p1 = por %p607_p0, %p606_p13 }
  0x2c   : > { %p609_p2 = pnand %p608_p1, %p602_p11 }
  0x2e   : > { %612 = shalt.err (!%p609_p2)
}
  0x2f   : > { %s699_s4 = smov 64   ;;  %s700_s19 = smov 32  }
  0x30   : > { %s701_s5 = smov 2   ;;  %p897_p5 = scmp.ne.s32.totalorder %s895_s22, 0 }
  0x31   : > { %490 = dma.hbm_to_vmem [thread:$0]  (!%p786_p12), %s170_s10, 256, %s172_s7, %s159_s23, %s699_s4, %s700_s19, %s701_s5  }
  0x32   : > { %183 = sbr.rel (%p897_p5) target bundleno = 390 (0x186), region = 32  ;;  %s185_s25 = sand.u32 (!%p897_p5), 1, %s679_s13  }
  0x33   : > { %s464_s6 = sshll.u32 (!%p897_p5), %s185_s25, 4  ;;  %s186_s8 = scalar_lea.sflag (!%p897_p5), [#allocation4], %s185_s25 }
  0x34   : > { %s814_s9 = scalar_lea.vmem (!%p897_p5), [#allocation3], %s464_s6  ;;  %p898_p7 = scmp.ne.s32.totalorder (!%p897_p5), %s894_s21, 0 }
  0x37   : > { %662 = dma.done.wait (%p898_p7), %s186_s8, 256  }
  0x38   : > { %664 = vsyncadd (%p898_p7), %s186_s8, 4294967040 }
  0x39   : > { %666 = dma.done.wait (%p764_p3), [#allocation7], 64  }
  0x3a   : > { %668 = vsyncadd (%p764_p3), [#allocation7], 4294967232  ;;  %p466_p12 = scmp.ne.s32.totalorder %s687_s15, 0 }
  0x3c   : > { %215 = sbr.rel (%p466_p12) target bundleno = 67 (0x43), region = 44 }
  0x41   : > { %vm216_vm0 = vcmask 31744   ;;  %v702_v0 = vmov 0.0  }
  0x42   : > { %217 = vst.msk [vmem:[#allocation2] sm:$0xff] %vm216_vm0, %v702_v0 }
  0x43 PF: > { %v219_v1 = vld [vmem:[%s814_s9] sm:$0x3]  ;;  %vm235_vm1 = vcmask 1043456   ;;  %v221_v2 = vld [vmem:[%s814_s9 + $0x4] sm:$0x3]  ;;  %v268_v25 = vlaneseq  ;;  %vm302_vm2 = vcmask 1041409  }
  0x44   : > { %v227_v3 = vunpack.c.l.bf16 %v219_v1  ;;  %v229_v4 = vunpack.c.l.bf16 %v221_v2  ;;  %v220_v5 = vld [vmem:[%s814_s9 + $0x2] sm:$0x3]  ;;  %v222_v6 = vld [vmem:[%s814_s9 + $0x6] sm:$0x3]  ;;  %v223_v9 = vld [vmem:[%s814_s9 + $0x8] sm:$0x3] }
  0x45   : > { %v228_v7 = vunpack.c.l.bf16 %v220_v5  ;;  %v230_v8 = vunpack.c.l.bf16 %v222_v6  ;;  %v224_v10 = vld [vmem:[%s814_s9 + $0xa] sm:$0x3]  ;;  %v231_v15 = vunpack.c.l.bf16 %v223_v9  ;;  %v225_v17 = vld [vmem:[%s814_s9 + $0xc] sm:$0x3]  ;;  %v226_v18 = vld [vmem:[%s814_s9 + $0xe] sm:$0x3] }
  0x46   : > { %v236_v11 = vsel %vm235_vm1, %v227_v3, 0.0  ;;  %v242_v12 = vsel %vm235_vm1, %v229_v4, 0.0  ;;  %v232_v16 = vunpack.c.l.bf16 %v224_v10  ;;  %v233_v21 = vunpack.c.l.bf16 %v225_v17  ;;  %p467_p3 = scmp.ne.s32.totalorder %s687_s15, 1 }
  0x47   : > { %237 = vadd.xlane.f32.xlu0 %v236_v11  ;;  %243 = vadd.xlane.f32.xlu1 %v242_v12  ;;  %v239_v13 = vsel %vm235_vm1, %v228_v7, 0.0  ;;  %v245_v14 = vsel %vm235_vm1, %v230_v8, 0.0  ;;  %v248_v19 = vsel %vm235_vm1, %v231_v15, 0.0  ;;  %v234_v22 = vunpack.c.l.bf16 %v226_v18 }
  0x48   : > { %v251_v20 = vsel %vm235_vm1, %v232_v16, 0.0  ;;  %v254_v23 = vsel %vm235_vm1, %v233_v21, 0.0  ;;  %v269_v26 = vand.u32 127, %v268_v25  ;;  %v841_v27 = vshrl.u32 %v268_v25, 7 }
  0x49   : > { %v257_v24 = vsel %vm235_vm1, %v234_v22, 0.0  ;;  %vm304_vm3 = vcmask 1042434   ;;  %vm306_vm4 = vcmask 1043459   ;;  %vm308_vm5 = vcmask 1044484   ;;  %v218_v50 = vld [vmem:[#allocation2] sm:$0xff] }
  0x4a   : > { %v272_v30 = vsub.s32 %v269_v26, %v841_v27  ;;  %vm310_vm6 = vcmask 1045509   ;;  %vm312_vm7 = vcmask 1046534   ;;  %vm314_vm8 = vcmask 1047559  }
  0x4b   : > { %240 = vadd.xlane.f32.xlu0 %v239_v13  ;;  %246 = vadd.xlane.f32.xlu1 %v245_v14  ;;  %vm318_vm9 = vcmask 31744  }
  0x4f   : > { %249 = vadd.xlane.f32.xlu0 %v248_v19  ;;  %252 = vadd.xlane.f32.xlu1 %v251_v20 }
  0x53   : > { %255 = vadd.xlane.f32.xlu0 %v254_v23  ;;  %258 = vadd.xlane.f32.xlu1 %v257_v24 }
  0xd0   : > { %v238_v28 = vpop.xlane.xlu0 %237  ;;  %v244_v29 = vpop.xlane.xlu1 %243 }
  0xd1   : > { %v273_v33 = vrot.slane %v238_v28, %v272_v30  ;;  %v281_v36 = vrot.slane %v244_v29, %v272_v30 }
  0xd4   : > { %v241_v31 = vpop.xlane.xlu0 %240  ;;  %v247_v32 = vpop.xlane.xlu1 %246 }
  0xd5   : > { %v277_v34 = vrot.slane %v241_v31, %v272_v30  ;;  %v285_v35 = vrot.slane %v247_v32, %v272_v30 }
  0xd7   : > { %v303_v37 = vsel %vm302_vm2, %v277_v34, %v273_v33 }
  0xd8   : > { %v305_v38 = vsel %vm304_vm3, %v281_v36, %v303_v37  ;;  %v250_v39 = vpop.xlane.xlu0 %249  ;;  %v253_v40 = vpop.xlane.xlu1 %252 }
  0xd9   : > { %v307_v41 = vsel %vm306_vm4, %v285_v35, %v305_v38  ;;  %v289_v42 = vrot.slane %v250_v39, %v272_v30  ;;  %v293_v43 = vrot.slane %v253_v40, %v272_v30 }
  0xdb   : > { %v309_v44 = vsel %vm308_vm5, %v289_v42, %v307_v41 }
  0xdc   : > { %v256_v45 = vpop.xlane.xlu0 %255  ;;  %v259_v46 = vpop.xlane.xlu1 %258  ;;  %v311_v49 = vsel %vm310_vm6, %v293_v43, %v309_v44 }
  0xdd   : > { %v297_v47 = vrot.slane %v256_v45, %v272_v30  ;;  %v301_v48 = vrot.slane %v259_v46, %v272_v30 }
  0xdf   : > { %v313_v51 = vsel %vm312_vm7, %v297_v47, %v311_v49  ;;  %323 = sbr.rel (%p467_p3) target bundleno = 375 (0x177), region = 48 }
  0xe0   : > { %v315_v52 = vsel %vm314_vm8, %v301_v48, %v313_v51 }
  0xe1   : > { %v317_v53 = vadd.f32 %v315_v52, %v218_v50 }
  0xe3   : > { %319 = vst.msk [vmem:[#allocation2] sm:$0xff] %vm318_vm9, %v317_v53 }
  0xe4   : > { %v703_v55 = vmov 0   ;;  %v704_v56 = vmov 2   ;;  %v705_v57 = vmov 1   ;;  %v706_v58 = vmov 3   ;;  %v325_v61 = vld [vmem:[#allocation6] sm:$0xf] }
  0xe5   : > { %554 = vset.pattern.permute.xlu0 %v703_v55  ;;  %556 = vset.pattern.permute.xlu1 %v704_v56  ;;  %v333_v59 = vsub.s32 0, %v841_v27  ;;  %v342_v60 = vsub.s32 1, %v841_v27  ;;  %v352_v63 = vsub.s32 2, %v841_v27  ;;  %v362_v1 = vsub.s32 3, %v841_v27  ;;  %v468_v14 = vld [vmem:[%s889_s2] ss:$0 sm:$0xff] }
  0xe7   : > { %v334_v2 = vrot.slane %v325_v61, %v333_v59  ;;  %v343_v3 = vrot.slane %v325_v61, %v342_v60  ;;  %v353_v4 = vrot.slane %v325_v61, %v352_v63  ;;  %v363_v5 = vrot.slane %v325_v61, %v362_v1 }
  0xea   : > { %v324_v54 = vld [vmem:[#allocation2] sm:$0xff] }
  0xeb   : > { %328 = vperm.xlu0 %554, %v324_v54   ;;  %347 = vperm.xlu1 %556, %v324_v54  }
  0xef   : > { %555 = vset.pattern.permute.xlu0 %v705_v57  ;;  %557 = vset.pattern.permute.xlu1 %v706_v58 }
  0xf0   : > { %337 = vperm.xlu0 %555, %v324_v54   ;;  %357 = vperm.xlu1 %557, %v324_v54  }
  0xf4   : > { %558 = vset.pattern.permute.xlu0 %v706_v58 }
 0x166   : > { %v329_v62 = vpop.permute.xlu0 %328  ;;  %v348_v0 = vpop.permute.xlu1 %347 }
 0x167   : > { %v335_v8 = vmul.f32 %v334_v2, %v329_v62  ;;  %v354_v10 = vmul.f32 %v353_v4, %v348_v0 }
 0x16b   : > { %v338_v6 = vpop.permute.xlu0 %337  ;;  %v358_v7 = vpop.permute.xlu1 %357 }
 0x16c   : > { %v344_v9 = vmul.f32 %v343_v3, %v338_v6  ;;  %v364_v12 = vmul.f32 %v363_v5, %v358_v7 }
 0x16e   : > { %v345_v11 = vadd.f32 %v344_v9, %v335_v8 }
 0x170   : > { %v355_v13 = vadd.f32 %v354_v10, %v345_v11 }
 0x172   : > { %v365_v15 = vadd.f32 %v364_v12, %v355_v13 }
 0x174   : > { %v373_v16 = vadd.f32 %v468_v14, %v365_v15 }
 0x176   : > { %374 = vst [vmem:[#allocation8] sm:$0xff] %v373_v16 }
 0x177 PF: > { %p854_p4 = scmp.eq.s32.totalorder %s457_s18, 1  ;;  %s707_s22 = smov [#allocation8]  }
 0x178   : > { %s384_s26 = sshll.u32 %s707_s22, 4  ;;  %s385_s26 = int_to_ptr.vmem [resolvable:$true] %s384_s26 }
 0x179   : > { %s613_s7 = scalar_lea.vmem %s385_s26, 128  ;;  %p620_p10 = scmp.lt.s32.totalorder %s385_s26, %s385_s26 }
 0x17a   : > { %p614_p6 = scmp.ne.s32.totalorder %s385_s26, %s613_s7  ;;  %p621_p11 = scmp.lt.s32.totalorder %s613_s7, %s613_s7 }
 0x17c   : > { %p615_p8 = pnand %p614_p6, %p854_p4  ;;  %p622_p13 = por %p621_p11, %p620_p10 }
 0x17e   : > { %p616_p9 = pneg %p615_p8 }
 0x180   : > { %p623_p0 = pnand %p622_p13, %p616_p9 }
 0x182   : > { %626 = shalt.err (!%p623_p0)
}
 0x183   : > { %480 = dma.vmem_to_hbm [thread:$0]  (%p854_p4), %s385_s26, 128, %s890_s3, [#allocation5]  }
 0x184   : > { %670 = dma.done.wait (%p854_p4), [#allocation5], 128  }
 0x185   : > { %672 = vsyncadd (%p854_p4), [#allocation5], 4294967168 }
 0x186 PF: > { %s18_s17 = sadd.s32 1, %s695_s17   ;;  %s900_s11 = smov %s805_s12 }
 0x187   : > { %p15_p1 = scmp.ge.s32.totalorder %s18_s17, 4   ;;  %s901_s12 = smov %s679_s13 }
 0x188   : > { %s902_s13 = smov %s683_s14  ;;  %s903_s14 = smov %s900_s11 }
 0x189   : > { %s904_s15 = smov %s691_s16  ;;  %s905_s16 = smov %s907_s30 }
 0x18a   :  { %17 = sbr.rel (!%p15_p1) target bundleno = 6 (0x6), region = 82 }
 0x18f   :  { %397 = vsyncpa [#allocation4], 1 }
 0x190   :  { %399 = vsyncpa [#allocation4 + $0x1], 1 }
 0x191   :  { %400 = vsyncpa [#allocation7], 1 }
 0x192   :  { %401 = vsyncpa [#allocation5], 1 }
 0x193   :  { %403 = vsyncpa [#allocation5 + $0x1], 1 }

</bundles_post_ra>
